<compile_context>
chip_gen: v5e
topology: v5e:2x2
jax: 0.10.0
libtpu: 0.0.40
codegen_flags: <defaults>
</compile_context>

<pallas_src>
import functools
import numpy as np
import jax
import jax.numpy as jnp
from jax.experimental import pallas as pl
from jax.experimental.pallas import tpu as pltpu


# ----------------------------- window helpers (reference check only) ----------
def window_partition(x, window_size):
    """x: (B, H, W, C) -> (num_windows*B, ws, ws, C)"""
    B, H, W, C = x.shape
    x = x.reshape(B, H // window_size, window_size, W // window_size, window_size, C)
    return x.transpose(0, 1, 3, 2, 4, 5).reshape(-1, window_size, window_size, C)


def window_reverse(windows, window_size, H, W):
    """windows: (num_windows*B, ws, ws, C) -> (B, H, W, C)"""
    B = windows.shape[0] // ((H // window_size) * (W // window_size))
    x = windows.reshape(B, H // window_size, W // window_size, window_size, window_size, -1)
    return x.transpose(0, 1, 3, 2, 4, 5).reshape(B, H, W, -1)


# ----------------------------- Pallas LSH + RGB kernel ------------------------
def _lsh_rgb_kernel(x_ref, rot_ref, out_ref, *,
                    n_hashes, half_buckets, n_feats, packed_colors):
    # x_ref:   (1, C, rb, 128) f32   sublane-dense pixel tile
    # rot_ref: (NH * HB/2 * C,) f32  SMEM scalars, [hash, bucket, channel] row-major
    # out_ref: (1, NH, rb, 128) u32  packed RGB (R | G<<8 | B<<16)
    xc = [x_ref[0, c] for c in range(n_feats)]        # C dense (rb, 128) tiles

    def score(h, j):
        # Exact-f32 scalar-splat multiply-accumulate over the tiny channel axis
        # (a K=4 MXU matmul would be ~97% padding).
        off = (h * half_buckets + j) * n_feats
        s = xc[0] * rot_ref[off]
        for c in range(1, n_feats):
            s = s + xc[c] * rot_ref[off + c]
        return s

    for h in range(n_hashes):
        s0 = score(h, 0)
        best_max = s0                                   # running max over +rot rows
        best_min = s0                                   # running min  (== max over -rot rows)
        max_col = jnp.full(s0.shape, packed_colors[0], jnp.uint32)
        min_col = jnp.full(s0.shape, packed_colors[half_buckets], jnp.uint32)
        for j in range(1, half_buckets):
            sj = score(h, j)
            gt = sj > best_max                          # strict >: first occurrence wins ties
            best_max = jnp.where(gt, sj, best_max)
            max_col = jnp.where(gt, jnp.uint32(packed_colors[j]), max_col)
            lt = sj < best_min                          # strict <: first occurrence wins ties
            best_min = jnp.where(lt, sj, best_min)
            min_col = jnp.where(lt, jnp.uint32(packed_colors[half_buckets + j]), min_col)
        # Tie between halves goes to the positive half (its indices precede the
        # negated half), matching torch.argmax first-occurrence on [+s | -s].
        pos_wins = best_max >= -best_min
        out_ref[0, h] = jnp.where(pos_wins, max_col, min_col)


def lsh_rgb_pallas(x_flat, rotations, n_hashes, hash_buckets, packed_colors,
                   pix_block=32768):
    """x_flat: (B, C, P) f32 pixels; rotations: (C, n_hashes, hash_buckets//2).
    Returns packed RGB codes (B, n_hashes, P) uint32 (R | G<<8 | B<<16)."""
    B, C, P = x_flat.shape
    half = hash_buckets // 2
    lanes = 128

    # rotations (C, NH, HB/2) -> flat [h, j, c] row-major, read as SMEM scalars.
    rot_flat = jnp.transpose(rotations.astype(jnp.float32), (1, 2, 0)).reshape(-1)

    # Pad the pixel axis to the 128-lane width so the layout is lane-dense.
    P_pad = ((P + lanes - 1) // lanes) * lanes
    if P_pad != P:
        x_flat = jnp.pad(x_flat, ((0, 0), (0, 0), (0, P_pad - P)))
    R = P_pad // lanes
    x4 = x_flat.reshape(B, C, R, lanes)                 # sublane-dense pixels

    # Chunk size along the row axis: big to amortize grid-step overhead, a
    # multiple of 8 sublanes; split the pixel axis when B == 1 so both v7x
    # TensorCores get work.
    rb = max(8, (pix_block // lanes) // 8 * 8)
    if B == 1 and R >= 16:
        rb = min(rb, ((pl.cdiv(R, 2) + 7) // 8) * 8)
    if rb >= R:
        rb = R                                          # full extent -> always legal
    grid = (B, pl.cdiv(R, rb))

    kernel = functools.partial(_lsh_rgb_kernel, n_hashes=n_hashes,
                               half_buckets=half, n_feats=C,
                               packed_colors=tuple(packed_colors))
    out4 = pl.pallas_call(
        kernel,
        out_shape=jax.ShapeDtypeStruct((B, n_hashes, R, lanes), jnp.uint32),
        grid=grid,
        in_specs=[
            pl.BlockSpec((1, C, rb, lanes), lambda b, p: (b, 0, p, 0)),
            pl.BlockSpec(memory_space=pltpu.MemorySpace.SMEM),
        ],
        out_specs=pl.BlockSpec((1, n_hashes, rb, lanes), lambda b, p: (b, 0, p, 0)),
        compiler_params=pltpu.CompilerParams(
            dimension_semantics=("parallel", "parallel")),
    )(x4, rot_flat)

    out = out4.reshape(B, n_hashes, P_pad)
    if P_pad != P:
        out = out[:, :, :P]
    return out


# ----------------------------- Cluster module ---------------------------------
class ClusterPallas:
    def __init__(self, hash_buckets=8, n_hashes=4, window_size=8):
        self.hash_buckets = hash_buckets
        self.n_hashes = n_hashes
        self.window_size = window_size
        self.color_R = (0, 46, 167, 100, 191, 220, 0, 10)
        self.color_G = (160, 141, 0, 62, 30, 87, 166, 91)
        self.color_B = (177, 239, 174, 191, 75, 46, 0, 196)
        assert hash_buckets == len(self.color_R), "color LUT defined for 8 buckets"
        # Packed RGB LUT baked into the kernel: R | G<<8 | B<<16.
        self.packed_colors = tuple(
            r | (g << 8) | (b << 16)
            for r, g, b in zip(self.color_R, self.color_G, self.color_B))

    def __call__(self, inp, rotations):
        # inp: (B, C, h, w) NCHW, same convention as the PyTorch module.
        B, C, h, w = inp.shape
        # Per-pixel hashes are independent of the window partition, so consume
        # the NCHW tensor directly via a free contiguous reshape.
        x_flat = inp.reshape(B, C, h * w)
        packed = lsh_rgb_pallas(x_flat, rotations, self.n_hashes,
                                self.hash_buckets, self.packed_colors)
        packed = packed.reshape(B, self.n_hashes, h, w).transpose(0, 2, 3, 1)
        hash_image_R = (packed & 0xFF).astype(jnp.uint8)
        hash_image_G = ((packed >> 8) & 0xFF).astype(jnp.uint8)
        hash_image_B = ((packed >> 16) & 0xFF).astype(jnp.uint8)
        return hash_image_R, hash_image_G, hash_image_B


# ----------------------------- demo / check -----------------------------------
if __name__ == "__main__":
    key = jax.random.PRNGKey(0)
    k_inp, k_rot = jax.random.split(key)

    B, C, h, w = 2, 4, 16, 16
    window_size, hash_buckets, n_hashes = 8, 8, 4

    inp = jax.random.normal(k_inp, (B, C, h, w), dtype=jnp.float32)
    # deterministic stand-in for torch.randn random rotations
    rotations = jax.random.normal(
        k_rot, (C, n_hashes, hash_buckets // 2), dtype=jnp.float32)

    cluster = ClusterPallas(hash_buckets=hash_buckets,
                            n_hashes=n_hashes, window_size=window_size)
    R, G, Bc = cluster(inp, rotations)
    jax.block_until_ready((R, G, Bc))

    # --- pure-JAX reference following the torch module literally ---
    # NHWC permute -> window_partition -> per-window LSH -> window_reverse -> LUT.
    # The einsum is written as an explicit f32 multiply-accumulate over the tiny
    # channel axis so the float op order matches the kernel exactly.
    x_nhwc = jnp.transpose(inp, (0, 2, 3, 1))
    fw = window_partition(x_nhwc, window_size)                       # (N, ws, ws, C)
    N = fw.shape[0]
    T = window_size * window_size
    x_embed = fw.reshape(N, T, C)
    rotated = x_embed[:, None, :, 0:1] * rotations[0][None, :, None, :]
    for c in range(1, C):   # == einsum('ntf,fhi->nhti', x_embed, rotations)
        rotated = rotated + x_embed[:, None, :, c:c + 1] * rotations[c][None, :, None, :]
    full = jnp.concatenate([rotated, -rotated], axis=-1)             # (N, NH, T, HB)
    codes_ref = jnp.argmax(full, axis=-1).astype(jnp.int32)          # (N, NH, T)
    hash_window = codes_ref.reshape(N, n_hashes, window_size, window_size)
    hash_window = hash_window.transpose(0, 2, 3, 1)                  # (N, ws, ws, NH)
    hash_feature = window_reverse(hash_window, window_size, h, w)    # (B, h, w, NH)
    lut_R = jnp.array(cluster.color_R, dtype=jnp.uint8)
    lut_G = jnp.array(cluster.color_G, dtype=jnp.uint8)
    lut_B = jnp.array(cluster.color_B, dtype=jnp.uint8)
    R_ref = lut_R[hash_feature]
    G_ref = lut_G[hash_feature]
    B_ref = lut_B[hash_feature]

    np.testing.assert_array_equal(np.asarray(R), np.asarray(R_ref))
    np.testing.assert_array_equal(np.asarray(G), np.asarray(G_ref))
    np.testing.assert_array_equal(np.asarray(Bc), np.asarray(B_ref))

    assert R.shape == (B, h, w, n_hashes) and R.dtype == jnp.uint8
    assert G.shape == (B, h, w, n_hashes) and G.dtype == jnp.uint8
    assert Bc.shape == (B, h, w, n_hashes) and Bc.dtype == jnp.uint8
    print("KERNEL_OK")
</pallas_src>

<mosaic_0001>
module attributes {stable_mosaic.version = 11 : i64} {
  func.func @_lsh_rgb_kernel(%arg0: i32, %arg1: i32, %arg2: memref<1x4x2x128xf32, #tpu.memory_space<vmem>>, %arg3: memref<64xf32, #tpu.memory_space<smem>>, %arg4: memref<1x4x2x128xi32, #tpu.memory_space<vmem>>) attributes {dimension_semantics = [#tpu.dimension_semantics<parallel>, #tpu.dimension_semantics<parallel>], iteration_bounds = array<i64: 2, 1>, scalar_prefetch = 0 : i64, scratch_operands = 0 : i64, tpu.core_type = #tpu.core_type<tc>, window_params = [{transform_indices = @transform_0, window_bounds = array<i64: 1, 4, 2, 128>}, {transform_indices = @transform_1, window_bounds = array<i64: 64>}, {transform_indices = @transform_2, window_bounds = array<i64: 1, 4, 2, 128>}]} {
    %c0 = arith.constant 0 : index
    %c0_0 = arith.constant 0 : index
    %c0_1 = arith.constant 0 : index
    %c0_2 = arith.constant 0 : index
    %0 = vector.load %arg2[%c0, %c0_0, %c0_1, %c0_2] : memref<1x4x2x128xf32, #tpu.memory_space<vmem>>, vector<1x1x2x128xf32>
    %1 = vector.shape_cast %0 : vector<1x1x2x128xf32> to vector<2x128xf32>
    %c0_3 = arith.constant 0 : index
    %c1 = arith.constant 1 : index
    %c0_4 = arith.constant 0 : index
    %c0_5 = arith.constant 0 : index
    %2 = vector.load %arg2[%c0_3, %c1, %c0_4, %c0_5] : memref<1x4x2x128xf32, #tpu.memory_space<vmem>>, vector<1x1x2x128xf32>
    %3 = vector.shape_cast %2 : vector<1x1x2x128xf32> to vector<2x128xf32>
    %c0_6 = arith.constant 0 : index
    %c2 = arith.constant 2 : index
    %c0_7 = arith.constant 0 : index
    %c0_8 = arith.constant 0 : index
    %4 = vector.load %arg2[%c0_6, %c2, %c0_7, %c0_8] : memref<1x4x2x128xf32, #tpu.memory_space<vmem>>, vector<1x1x2x128xf32>
    %5 = vector.shape_cast %4 : vector<1x1x2x128xf32> to vector<2x128xf32>
    %c0_9 = arith.constant 0 : index
    %c3 = arith.constant 3 : index
    %c0_10 = arith.constant 0 : index
    %c0_11 = arith.constant 0 : index
    %6 = vector.load %arg2[%c0_9, %c3, %c0_10, %c0_11] : memref<1x4x2x128xf32, #tpu.memory_space<vmem>>, vector<1x1x2x128xf32>
    %7 = vector.shape_cast %6 : vector<1x1x2x128xf32> to vector<2x128xf32>
    %c0_12 = arith.constant 0 : index
    %8 = memref.load %arg3[%c0_12] : memref<64xf32, #tpu.memory_space<smem>>
    %9 = vector.broadcast %8 : f32 to vector<2x128xf32>
    %10 = arith.mulf %1, %9 : vector<2x128xf32>
    %c1_13 = arith.constant 1 : index
    %11 = memref.load %arg3[%c1_13] : memref<64xf32, #tpu.memory_space<smem>>
    %12 = vector.broadcast %11 : f32 to vector<2x128xf32>
    %13 = arith.mulf %3, %12 : vector<2x128xf32>
    %14 = arith.addf %10, %13 : vector<2x128xf32>
    %c2_14 = arith.constant 2 : index
    %15 = memref.load %arg3[%c2_14] : memref<64xf32, #tpu.memory_space<smem>>
    %16 = vector.broadcast %15 : f32 to vector<2x128xf32>
    %17 = arith.mulf %5, %16 : vector<2x128xf32>
    %18 = arith.addf %14, %17 : vector<2x128xf32>
    %c3_15 = arith.constant 3 : index
    %19 = memref.load %arg3[%c3_15] : memref<64xf32, #tpu.memory_space<smem>>
    %20 = vector.broadcast %19 : f32 to vector<2x128xf32>
    %21 = arith.mulf %7, %20 : vector<2x128xf32>
    %22 = arith.addf %18, %21 : vector<2x128xf32>
    %c11640832_i32 = arith.constant 11640832 : i32
    %23 = vector.broadcast %c11640832_i32 : i32 to vector<2x128xi32>
    %c4923071_i32 = arith.constant 4923071 : i32
    %24 = vector.broadcast %c4923071_i32 : i32 to vector<2x128xi32>
    %c4 = arith.constant 4 : index
    %25 = memref.load %arg3[%c4] : memref<64xf32, #tpu.memory_space<smem>>
    %26 = vector.broadcast %25 : f32 to vector<2x128xf32>
    %27 = arith.mulf %1, %26 : vector<2x128xf32>
    %c5 = arith.constant 5 : index
    %28 = memref.load %arg3[%c5] : memref<64xf32, #tpu.memory_space<smem>>
    %29 = vector.broadcast %28 : f32 to vector<2x128xf32>
    %30 = arith.mulf %3, %29 : vector<2x128xf32>
    %31 = arith.addf %27, %30 : vector<2x128xf32>
    %c6 = arith.constant 6 : index
    %32 = memref.load %arg3[%c6] : memref<64xf32, #tpu.memory_space<smem>>
    %33 = vector.broadcast %32 : f32 to vector<2x128xf32>
    %34 = arith.mulf %5, %33 : vector<2x128xf32>
    %35 = arith.addf %31, %34 : vector<2x128xf32>
    %c7 = arith.constant 7 : index
    %36 = memref.load %arg3[%c7] : memref<64xf32, #tpu.memory_space<smem>>
    %37 = vector.broadcast %36 : f32 to vector<2x128xf32>
    %38 = arith.mulf %7, %37 : vector<2x128xf32>
    %39 = arith.addf %35, %38 : vector<2x128xf32>
    %40 = arith.cmpf ogt, %39, %22 : vector<2x128xf32>
    %41 = arith.select %40, %39, %22 : vector<2x128xi1>, vector<2x128xf32>
    %c15699246_i32 = arith.constant 15699246 : i32
    %42 = vector.broadcast %c15699246_i32 : i32 to vector<2x128xi32>
    %43 = arith.select %40, %42, %23 : vector<2x128xi1>, vector<2x128xi32>
    %44 = arith.cmpf olt, %39, %22 : vector<2x128xf32>
    %45 = arith.select %44, %39, %22 : vector<2x128xi1>, vector<2x128xf32>
    %c3037148_i32 = arith.constant 3037148 : i32
    %46 = vector.broadcast %c3037148_i32 : i32 to vector<2x128xi32>
    %47 = arith.select %44, %46, %24 : vector<2x128xi1>, vector<2x128xi32>
    %c8 = arith.constant 8 : index
    %48 = memref.load %arg3[%c8] : memref<64xf32, #tpu.memory_space<smem>>
    %49 = vector.broadcast %48 : f32 to vector<2x128xf32>
    %50 = arith.mulf %1, %49 : vector<2x128xf32>
    %c9 = arith.constant 9 : index
    %51 = memref.load %arg3[%c9] : memref<64xf32, #tpu.memory_space<smem>>
    %52 = vector.broadcast %51 : f32 to vector<2x128xf32>
    %53 = arith.mulf %3, %52 : vector<2x128xf32>
    %54 = arith.addf %50, %53 : vector<2x128xf32>
    %c10 = arith.constant 10 : index
    %55 = memref.load %arg3[%c10] : memref<64xf32, #tpu.memory_space<smem>>
    %56 = vector.broadcast %55 : f32 to vector<2x128xf32>
    %57 = arith.mulf %5, %56 : vector<2x128xf32>
    %58 = arith.addf %54, %57 : vector<2x128xf32>
    %c11 = arith.constant 11 : index
    %59 = memref.load %arg3[%c11] : memref<64xf32, #tpu.memory_space<smem>>
    %60 = vector.broadcast %59 : f32 to vector<2x128xf32>
    %61 = arith.mulf %7, %60 : vector<2x128xf32>
    %62 = arith.addf %58, %61 : vector<2x128xf32>
    %63 = arith.cmpf ogt, %62, %41 : vector<2x128xf32>
    %64 = arith.select %63, %62, %41 : vector<2x128xi1>, vector<2x128xf32>
    %c11403431_i32 = arith.constant 11403431 : i32
    %65 = vector.broadcast %c11403431_i32 : i32 to vector<2x128xi32>
    %66 = arith.select %63, %65, %43 : vector<2x128xi1>, vector<2x128xi32>
    %67 = arith.cmpf olt, %62, %45 : vector<2x128xf32>
    %68 = arith.select %67, %62, %45 : vector<2x128xi1>, vector<2x128xf32>
    %c42496_i32 = arith.constant 42496 : i32
    %69 = vector.broadcast %c42496_i32 : i32 to vector<2x128xi32>
    %70 = arith.select %67, %69, %47 : vector<2x128xi1>, vector<2x128xi32>
    %c12 = arith.constant 12 : index
    %71 = memref.load %arg3[%c12] : memref<64xf32, #tpu.memory_space<smem>>
    %72 = vector.broadcast %71 : f32 to vector<2x128xf32>
    %73 = arith.mulf %1, %72 : vector<2x128xf32>
    %c13 = arith.constant 13 : index
    %74 = memref.load %arg3[%c13] : memref<64xf32, #tpu.memory_space<smem>>
    %75 = vector.broadcast %74 : f32 to vector<2x128xf32>
    %76 = arith.mulf %3, %75 : vector<2x128xf32>
    %77 = arith.addf %73, %76 : vector<2x128xf32>
    %c14 = arith.constant 14 : index
    %78 = memref.load %arg3[%c14] : memref<64xf32, #tpu.memory_space<smem>>
    %79 = vector.broadcast %78 : f32 to vector<2x128xf32>
    %80 = arith.mulf %5, %79 : vector<2x128xf32>
    %81 = arith.addf %77, %80 : vector<2x128xf32>
    %c15 = arith.constant 15 : index
    %82 = memref.load %arg3[%c15] : memref<64xf32, #tpu.memory_space<smem>>
    %83 = vector.broadcast %82 : f32 to vector<2x128xf32>
    %84 = arith.mulf %7, %83 : vector<2x128xf32>
    %85 = arith.addf %81, %84 : vector<2x128xf32>
    %86 = arith.cmpf ogt, %85, %64 : vector<2x128xf32>
    %87 = arith.select %86, %85, %64 : vector<2x128xi1>, vector<2x128xf32>
    %c12533348_i32 = arith.constant 12533348 : i32
    %88 = vector.broadcast %c12533348_i32 : i32 to vector<2x128xi32>
    %89 = arith.select %86, %88, %66 : vector<2x128xi1>, vector<2x128xi32>
    %90 = arith.cmpf olt, %85, %68 : vector<2x128xf32>
    %91 = arith.select %90, %85, %68 : vector<2x128xi1>, vector<2x128xf32>
    %c12868362_i32 = arith.constant 12868362 : i32
    %92 = vector.broadcast %c12868362_i32 : i32 to vector<2x128xi32>
    %93 = arith.select %90, %92, %70 : vector<2x128xi1>, vector<2x128xi32>
    %cst = arith.constant 0.000000e+00 : f32
    %94 = vector.broadcast %cst : f32 to vector<2x128xf32>
    %95 = arith.subf %94, %91 : vector<2x128xf32>
    %96 = arith.cmpf oge, %87, %95 : vector<2x128xf32>
    %97 = arith.select %96, %89, %93 : vector<2x128xi1>, vector<2x128xi32>
    %c0_16 = arith.constant 0 : index
    %c0_17 = arith.constant 0 : index
    %c0_18 = arith.constant 0 : index
    %c0_19 = arith.constant 0 : index
    %98 = vector.load %arg4[%c0_16, %c0_17, %c0_18, %c0_19] : memref<1x4x2x128xi32, #tpu.memory_space<vmem>>, vector<1x1x2x128xi32>
    %99 = vector.shape_cast %98 : vector<1x1x2x128xi32> to vector<2x128xi32>
    %100 = vector.shape_cast %97 : vector<2x128xi32> to vector<1x1x2x128xi32>
    tpu.vector_store %arg4[%c0_16, %c0_17, %c0_18, %c0_19], %100 {strides = array<i32>} : memref<1x4x2x128xi32, #tpu.memory_space<vmem>>, vector<1x1x2x128xi32>,
    %c16 = arith.constant 16 : index
    %101 = memref.load %arg3[%c16] : memref<64xf32, #tpu.memory_space<smem>>
    %102 = vector.broadcast %101 : f32 to vector<2x128xf32>
    %103 = arith.mulf %1, %102 : vector<2x128xf32>
    %c17 = arith.constant 17 : index
    %104 = memref.load %arg3[%c17] : memref<64xf32, #tpu.memory_space<smem>>
    %105 = vector.broadcast %104 : f32 to vector<2x128xf32>
    %106 = arith.mulf %3, %105 : vector<2x128xf32>
    %107 = arith.addf %103, %106 : vector<2x128xf32>
    %c18 = arith.constant 18 : index
    %108 = memref.load %arg3[%c18] : memref<64xf32, #tpu.memory_space<smem>>
    %109 = vector.broadcast %108 : f32 to vector<2x128xf32>
    %110 = arith.mulf %5, %109 : vector<2x128xf32>
    %111 = arith.addf %107, %110 : vector<2x128xf32>
    %c19 = arith.constant 19 : index
    %112 = memref.load %arg3[%c19] : memref<64xf32, #tpu.memory_space<smem>>
    %113 = vector.broadcast %112 : f32 to vector<2x128xf32>
    %114 = arith.mulf %7, %113 : vector<2x128xf32>
    %115 = arith.addf %111, %114 : vector<2x128xf32>
    %c11640832_i32_20 = arith.constant 11640832 : i32
    %116 = vector.broadcast %c11640832_i32_20 : i32 to vector<2x128xi32>
    %c4923071_i32_21 = arith.constant 4923071 : i32
    %117 = vector.broadcast %c4923071_i32_21 : i32 to vector<2x128xi32>
    %c20 = arith.constant 20 : index
    %118 = memref.load %arg3[%c20] : memref<64xf32, #tpu.memory_space<smem>>
    %119 = vector.broadcast %118 : f32 to vector<2x128xf32>
    %120 = arith.mulf %1, %119 : vector<2x128xf32>
    %c21 = arith.constant 21 : index
    %121 = memref.load %arg3[%c21] : memref<64xf32, #tpu.memory_space<smem>>
    %122 = vector.broadcast %121 : f32 to vector<2x128xf32>
    %123 = arith.mulf %3, %122 : vector<2x128xf32>
    %124 = arith.addf %120, %123 : vector<2x128xf32>
    %c22 = arith.constant 22 : index
    %125 = memref.load %arg3[%c22] : memref<64xf32, #tpu.memory_space<smem>>
    %126 = vector.broadcast %125 : f32 to vector<2x128xf32>
    %127 = arith.mulf %5, %126 : vector<2x128xf32>
    %128 = arith.addf %124, %127 : vector<2x128xf32>
    %c23 = arith.constant 23 : index
    %129 = memref.load %arg3[%c23] : memref<64xf32, #tpu.memory_space<smem>>
    %130 = vector.broadcast %129 : f32 to vector<2x128xf32>
    %131 = arith.mulf %7, %130 : vector<2x128xf32>
    %132 = arith.addf %128, %131 : vector<2x128xf32>
    %133 = arith.cmpf ogt, %132, %115 : vector<2x128xf32>
    %134 = arith.select %133, %132, %115 : vector<2x128xi1>, vector<2x128xf32>
    %c15699246_i32_22 = arith.constant 15699246 : i32
    %135 = vector.broadcast %c15699246_i32_22 : i32 to vector<2x128xi32>
    %136 = arith.select %133, %135, %116 : vector<2x128xi1>, vector<2x128xi32>
    %137 = arith.cmpf olt, %132, %115 : vector<2x128xf32>
    %138 = arith.select %137, %132, %115 : vector<2x128xi1>, vector<2x128xf32>
    %c3037148_i32_23 = arith.constant 3037148 : i32
    %139 = vector.broadcast %c3037148_i32_23 : i32 to vector<2x128xi32>
    %140 = arith.select %137, %139, %117 : vector<2x128xi1>, vector<2x128xi32>
    %c24 = arith.constant 24 : index
    %141 = memref.load %arg3[%c24] : memref<64xf32, #tpu.memory_space<smem>>
    %142 = vector.broadcast %141 : f32 to vector<2x128xf32>
    %143 = arith.mulf %1, %142 : vector<2x128xf32>
    %c25 = arith.constant 25 : index
    %144 = memref.load %arg3[%c25] : memref<64xf32, #tpu.memory_space<smem>>
    %145 = vector.broadcast %144 : f32 to vector<2x128xf32>
    %146 = arith.mulf %3, %145 : vector<2x128xf32>
    %147 = arith.addf %143, %146 : vector<2x128xf32>
    %c26 = arith.constant 26 : index
    %148 = memref.load %arg3[%c26] : memref<64xf32, #tpu.memory_space<smem>>
    %149 = vector.broadcast %148 : f32 to vector<2x128xf32>
    %150 = arith.mulf %5, %149 : vector<2x128xf32>
    %151 = arith.addf %147, %150 : vector<2x128xf32>
    %c27 = arith.constant 27 : index
    %152 = memref.load %arg3[%c27] : memref<64xf32, #tpu.memory_space<smem>>
    %153 = vector.broadcast %152 : f32 to vector<2x128xf32>
    %154 = arith.mulf %7, %153 : vector<2x128xf32>
    %155 = arith.addf %151, %154 : vector<2x128xf32>
    %156 = arith.cmpf ogt, %155, %134 : vector<2x128xf32>
    %157 = arith.select %156, %155, %134 : vector<2x128xi1>, vector<2x128xf32>
    %c11403431_i32_24 = arith.constant 11403431 : i32
    %158 = vector.broadcast %c11403431_i32_24 : i32 to vector<2x128xi32>
    %159 = arith.select %156, %158, %136 : vector<2x128xi1>, vector<2x128xi32>
    %160 = arith.cmpf olt, %155, %138 : vector<2x128xf32>
    %161 = arith.select %160, %155, %138 : vector<2x128xi1>, vector<2x128xf32>
    %c42496_i32_25 = arith.constant 42496 : i32
    %162 = vector.broadcast %c42496_i32_25 : i32 to vector<2x128xi32>
    %163 = arith.select %160, %162, %140 : vector<2x128xi1>, vector<2x128xi32>
    %c28 = arith.constant 28 : index
    %164 = memref.load %arg3[%c28] : memref<64xf32, #tpu.memory_space<smem>>
    %165 = vector.broadcast %164 : f32 to vector<2x128xf32>
    %166 = arith.mulf %1, %165 : vector<2x128xf32>
    %c29 = arith.constant 29 : index
    %167 = memref.load %arg3[%c29] : memref<64xf32, #tpu.memory_space<smem>>
    %168 = vector.broadcast %167 : f32 to vector<2x128xf32>
    %169 = arith.mulf %3, %168 : vector<2x128xf32>
    %170 = arith.addf %166, %169 : vector<2x128xf32>
    %c30 = arith.constant 30 : index
    %171 = memref.load %arg3[%c30] : memref<64xf32, #tpu.memory_space<smem>>
    %172 = vector.broadcast %171 : f32 to vector<2x128xf32>
    %173 = arith.mulf %5, %172 : vector<2x128xf32>
    %174 = arith.addf %170, %173 : vector<2x128xf32>
    %c31 = arith.constant 31 : index
    %175 = memref.load %arg3[%c31] : memref<64xf32, #tpu.memory_space<smem>>
    %176 = vector.broadcast %175 : f32 to vector<2x128xf32>
    %177 = arith.mulf %7, %176 : vector<2x128xf32>
    %178 = arith.addf %174, %177 : vector<2x128xf32>
    %179 = arith.cmpf ogt, %178, %157 : vector<2x128xf32>
    %180 = arith.select %179, %178, %157 : vector<2x128xi1>, vector<2x128xf32>
    %c12533348_i32_26 = arith.constant 12533348 : i32
    %181 = vector.broadcast %c12533348_i32_26 : i32 to vector<2x128xi32>
    %182 = arith.select %179, %181, %159 : vector<2x128xi1>, vector<2x128xi32>
    %183 = arith.cmpf olt, %178, %161 : vector<2x128xf32>
    %184 = arith.select %183, %178, %161 : vector<2x128xi1>, vector<2x128xf32>
    %c12868362_i32_27 = arith.constant 12868362 : i32
    %185 = vector.broadcast %c12868362_i32_27 : i32 to vector<2x128xi32>
    %186 = arith.select %183, %185, %163 : vector<2x128xi1>, vector<2x128xi32>
    %cst_28 = arith.constant 0.000000e+00 : f32
    %187 = vector.broadcast %cst_28 : f32 to vector<2x128xf32>
    %188 = arith.subf %187, %184 : vector<2x128xf32>
    %189 = arith.cmpf oge, %180, %188 : vector<2x128xf32>
    %190 = arith.select %189, %182, %186 : vector<2x128xi1>, vector<2x128xi32>
    %c0_29 = arith.constant 0 : index
    %c1_30 = arith.constant 1 : index
    %c0_31 = arith.constant 0 : index
    %c0_32 = arith.constant 0 : index
    %191 = vector.load %arg4[%c0_29, %c1_30, %c0_31, %c0_32] : memref<1x4x2x128xi32, #tpu.memory_space<vmem>>, vector<1x1x2x128xi32>
    %192 = vector.shape_cast %191 : vector<1x1x2x128xi32> to vector<2x128xi32>
    %193 = vector.shape_cast %190 : vector<2x128xi32> to vector<1x1x2x128xi32>
    tpu.vector_store %arg4[%c0_29, %c1_30, %c0_31, %c0_32], %193 {strides = array<i32>} : memref<1x4x2x128xi32, #tpu.memory_space<vmem>>, vector<1x1x2x128xi32>,
    %c32 = arith.constant 32 : index
    %194 = memref.load %arg3[%c32] : memref<64xf32, #tpu.memory_space<smem>>
    %195 = vector.broadcast %194 : f32 to vector<2x128xf32>
    %196 = arith.mulf %1, %195 : vector<2x128xf32>
    %c33 = arith.constant 33 : index
    %197 = memref.load %arg3[%c33] : memref<64xf32, #tpu.memory_space<smem>>
    %198 = vector.broadcast %197 : f32 to vector<2x128xf32>
    %199 = arith.mulf %3, %198 : vector<2x128xf32>
    %200 = arith.addf %196, %199 : vector<2x128xf32>
    %c34 = arith.constant 34 : index
    %201 = memref.load %arg3[%c34] : memref<64xf32, #tpu.memory_space<smem>>
    %202 = vector.broadcast %201 : f32 to vector<2x128xf32>
    %203 = arith.mulf %5, %202 : vector<2x128xf32>
    %204 = arith.addf %200, %203 : vector<2x128xf32>
    %c35 = arith.constant 35 : index
    %205 = memref.load %arg3[%c35] : memref<64xf32, #tpu.memory_space<smem>>
    %206 = vector.broadcast %205 : f32 to vector<2x128xf32>
    %207 = arith.mulf %7, %206 : vector<2x128xf32>
    %208 = arith.addf %204, %207 : vector<2x128xf32>
    %c11640832_i32_33 = arith.constant 11640832 : i32
    %209 = vector.broadcast %c11640832_i32_33 : i32 to vector<2x128xi32>
    %c4923071_i32_34 = arith.constant 4923071 : i32
    %210 = vector.broadcast %c4923071_i32_34 : i32 to vector<2x128xi32>
    %c36 = arith.constant 36 : index
    %211 = memref.load %arg3[%c36] : memref<64xf32, #tpu.memory_space<smem>>
    %212 = vector.broadcast %211 : f32 to vector<2x128xf32>
    %213 = arith.mulf %1, %212 : vector<2x128xf32>
    %c37 = arith.constant 37 : index
    %214 = memref.load %arg3[%c37] : memref<64xf32, #tpu.memory_space<smem>>
    %215 = vector.broadcast %214 : f32 to vector<2x128xf32>
    %216 = arith.mulf %3, %215 : vector<2x128xf32>
    %217 = arith.addf %213, %216 : vector<2x128xf32>
    %c38 = arith.constant 38 : index
    %218 = memref.load %arg3[%c38] : memref<64xf32, #tpu.memory_space<smem>>
    %219 = vector.broadcast %218 : f32 to vector<2x128xf32>
    %220 = arith.mulf %5, %219 : vector<2x128xf32>
    %221 = arith.addf %217, %220 : vector<2x128xf32>
    %c39 = arith.constant 39 : index
    %222 = memref.load %arg3[%c39] : memref<64xf32, #tpu.memory_space<smem>>
    %223 = vector.broadcast %222 : f32 to vector<2x128xf32>
    %224 = arith.mulf %7, %223 : vector<2x128xf32>
    %225 = arith.addf %221, %224 : vector<2x128xf32>
    %226 = arith.cmpf ogt, %225, %208 : vector<2x128xf32>
    %227 = arith.select %226, %225, %208 : vector<2x128xi1>, vector<2x128xf32>
    %c15699246_i32_35 = arith.constant 15699246 : i32
    %228 = vector.broadcast %c15699246_i32_35 : i32 to vector<2x128xi32>
    %229 = arith.select %226, %228, %209 : vector<2x128xi1>, vector<2x128xi32>
    %230 = arith.cmpf olt, %225, %208 : vector<2x128xf32>
    %231 = arith.select %230, %225, %208 : vector<2x128xi1>, vector<2x128xf32>
    %c3037148_i32_36 = arith.constant 3037148 : i32
    %232 = vector.broadcast %c3037148_i32_36 : i32 to vector<2x128xi32>
    %233 = arith.select %230, %232, %210 : vector<2x128xi1>, vector<2x128xi32>
    %c40 = arith.constant 40 : index
    %234 = memref.load %arg3[%c40] : memref<64xf32, #tpu.memory_space<smem>>
    %235 = vector.broadcast %234 : f32 to vector<2x128xf32>
    %236 = arith.mulf %1, %235 : vector<2x128xf32>
    %c41 = arith.constant 41 : index
    %237 = memref.load %arg3[%c41] : memref<64xf32, #tpu.memory_space<smem>>
    %238 = vector.broadcast %237 : f32 to vector<2x128xf32>
    %239 = arith.mulf %3, %238 : vector<2x128xf32>
    %240 = arith.addf %236, %239 : vector<2x128xf32>
    %c42 = arith.constant 42 : index
    %241 = memref.load %arg3[%c42] : memref<64xf32, #tpu.memory_space<smem>>
    %242 = vector.broadcast %241 : f32 to vector<2x128xf32>
    %243 = arith.mulf %5, %242 : vector<2x128xf32>
    %244 = arith.addf %240, %243 : vector<2x128xf32>
    %c43 = arith.constant 43 : index
    %245 = memref.load %arg3[%c43] : memref<64xf32, #tpu.memory_space<smem>>
    %246 = vector.broadcast %245 : f32 to vector<2x128xf32>
    %247 = arith.mulf %7, %246 : vector<2x128xf32>
    %248 = arith.addf %244, %247 : vector<2x128xf32>
    %249 = arith.cmpf ogt, %248, %227 : vector<2x128xf32>
    %250 = arith.select %249, %248, %227 : vector<2x128xi1>, vector<2x128xf32>
    %c11403431_i32_37 = arith.constant 11403431 : i32
    %251 = vector.broadcast %c11403431_i32_37 : i32 to vector<2x128xi32>
    %252 = arith.select %249, %251, %229 : vector<2x128xi1>, vector<2x128xi32>
    %253 = arith.cmpf olt, %248, %231 : vector<2x128xf32>
    %254 = arith.select %253, %248, %231 : vector<2x128xi1>, vector<2x128xf32>
    %c42496_i32_38 = arith.constant 42496 : i32
    %255 = vector.broadcast %c42496_i32_38 : i32 to vector<2x128xi32>
    %256 = arith.select %253, %255, %233 : vector<2x128xi1>, vector<2x128xi32>
    %c44 = arith.constant 44 : index
    %257 = memref.load %arg3[%c44] : memref<64xf32, #tpu.memory_space<smem>>
    %258 = vector.broadcast %257 : f32 to vector<2x128xf32>
    %259 = arith.mulf %1, %258 : vector<2x128xf32>
    %c45 = arith.constant 45 : index
    %260 = memref.load %arg3[%c45] : memref<64xf32, #tpu.memory_space<smem>>
    %261 = vector.broadcast %260 : f32 to vector<2x128xf32>
    %262 = arith.mulf %3, %261 : vector<2x128xf32>
    %263 = arith.addf %259, %262 : vector<2x128xf32>
    %c46 = arith.constant 46 : index
    %264 = memref.load %arg3[%c46] : memref<64xf32, #tpu.memory_space<smem>>
    %265 = vector.broadcast %264 : f32 to vector<2x128xf32>
    %266 = arith.mulf %5, %265 : vector<2x128xf32>
    %267 = arith.addf %263, %266 : vector<2x128xf32>
    %c47 = arith.constant 47 : index
    %268 = memref.load %arg3[%c47] : memref<64xf32, #tpu.memory_space<smem>>
    %269 = vector.broadcast %268 : f32 to vector<2x128xf32>
    %270 = arith.mulf %7, %269 : vector<2x128xf32>
    %271 = arith.addf %267, %270 : vector<2x128xf32>
    %272 = arith.cmpf ogt, %271, %250 : vector<2x128xf32>
    %273 = arith.select %272, %271, %250 : vector<2x128xi1>, vector<2x128xf32>
    %c12533348_i32_39 = arith.constant 12533348 : i32
    %274 = vector.broadcast %c12533348_i32_39 : i32 to vector<2x128xi32>
    %275 = arith.select %272, %274, %252 : vector<2x128xi1>, vector<2x128xi32>
    %276 = arith.cmpf olt, %271, %254 : vector<2x128xf32>
    %277 = arith.select %276, %271, %254 : vector<2x128xi1>, vector<2x128xf32>
    %c12868362_i32_40 = arith.constant 12868362 : i32
    %278 = vector.broadcast %c12868362_i32_40 : i32 to vector<2x128xi32>
    %279 = arith.select %276, %278, %256 : vector<2x128xi1>, vector<2x128xi32>
    %cst_41 = arith.constant 0.000000e+00 : f32
    %280 = vector.broadcast %cst_41 : f32 to vector<2x128xf32>
    %281 = arith.subf %280, %277 : vector<2x128xf32>
    %282 = arith.cmpf oge, %273, %281 : vector<2x128xf32>
    %283 = arith.select %282, %275, %279 : vector<2x128xi1>, vector<2x128xi32>
    %c0_42 = arith.constant 0 : index
    %c2_43 = arith.constant 2 : index
    %c0_44 = arith.constant 0 : index
    %c0_45 = arith.constant 0 : index
    %284 = vector.load %arg4[%c0_42, %c2_43, %c0_44, %c0_45] : memref<1x4x2x128xi32, #tpu.memory_space<vmem>>, vector<1x1x2x128xi32>
    %285 = vector.shape_cast %284 : vector<1x1x2x128xi32> to vector<2x128xi32>
    %286 = vector.shape_cast %283 : vector<2x128xi32> to vector<1x1x2x128xi32>
    tpu.vector_store %arg4[%c0_42, %c2_43, %c0_44, %c0_45], %286 {strides = array<i32>} : memref<1x4x2x128xi32, #tpu.memory_space<vmem>>, vector<1x1x2x128xi32>,
    %c48 = arith.constant 48 : index
    %287 = memref.load %arg3[%c48] : memref<64xf32, #tpu.memory_space<smem>>
    %288 = vector.broadcast %287 : f32 to vector<2x128xf32>
    %289 = arith.mulf %1, %288 : vector<2x128xf32>
    %c49 = arith.constant 49 : index
    %290 = memref.load %arg3[%c49] : memref<64xf32, #tpu.memory_space<smem>>
    %291 = vector.broadcast %290 : f32 to vector<2x128xf32>
    %292 = arith.mulf %3, %291 : vector<2x128xf32>
    %293 = arith.addf %289, %292 : vector<2x128xf32>
    %c50 = arith.constant 50 : index
    %294 = memref.load %arg3[%c50] : memref<64xf32, #tpu.memory_space<smem>>
    %295 = vector.broadcast %294 : f32 to vector<2x128xf32>
    %296 = arith.mulf %5, %295 : vector<2x128xf32>
    %297 = arith.addf %293, %296 : vector<2x128xf32>
    %c51 = arith.constant 51 : index
    %298 = memref.load %arg3[%c51] : memref<64xf32, #tpu.memory_space<smem>>
    %299 = vector.broadcast %298 : f32 to vector<2x128xf32>
    %300 = arith.mulf %7, %299 : vector<2x128xf32>
    %301 = arith.addf %297, %300 : vector<2x128xf32>
    %c11640832_i32_46 = arith.constant 11640832 : i32
    %302 = vector.broadcast %c11640832_i32_46 : i32 to vector<2x128xi32>
    %c4923071_i32_47 = arith.constant 4923071 : i32
    %303 = vector.broadcast %c4923071_i32_47 : i32 to vector<2x128xi32>
    %c52 = arith.constant 52 : index
    %304 = memref.load %arg3[%c52] : memref<64xf32, #tpu.memory_space<smem>>
    %305 = vector.broadcast %304 : f32 to vector<2x128xf32>
    %306 = arith.mulf %1, %305 : vector<2x128xf32>
    %c53 = arith.constant 53 : index
    %307 = memref.load %arg3[%c53] : memref<64xf32, #tpu.memory_space<smem>>
    %308 = vector.broadcast %307 : f32 to vector<2x128xf32>
    %309 = arith.mulf %3, %308 : vector<2x128xf32>
    %310 = arith.addf %306, %309 : vector<2x128xf32>
    %c54 = arith.constant 54 : index
    %311 = memref.load %arg3[%c54] : memref<64xf32, #tpu.memory_space<smem>>
    %312 = vector.broadcast %311 : f32 to vector<2x128xf32>
    %313 = arith.mulf %5, %312 : vector<2x128xf32>
    %314 = arith.addf %310, %313 : vector<2x128xf32>
    %c55 = arith.constant 55 : index
    %315 = memref.load %arg3[%c55] : memref<64xf32, #tpu.memory_space<smem>>
    %316 = vector.broadcast %315 : f32 to vector<2x128xf32>
    %317 = arith.mulf %7, %316 : vector<2x128xf32>
    %318 = arith.addf %314, %317 : vector<2x128xf32>
    %319 = arith.cmpf ogt, %318, %301 : vector<2x128xf32>
    %320 = arith.select %319, %318, %301 : vector<2x128xi1>, vector<2x128xf32>
    %c15699246_i32_48 = arith.constant 15699246 : i32
    %321 = vector.broadcast %c15699246_i32_48 : i32 to vector<2x128xi32>
    %322 = arith.select %319, %321, %302 : vector<2x128xi1>, vector<2x128xi32>
    %323 = arith.cmpf olt, %318, %301 : vector<2x128xf32>
    %324 = arith.select %323, %318, %301 : vector<2x128xi1>, vector<2x128xf32>
    %c3037148_i32_49 = arith.constant 3037148 : i32
    %325 = vector.broadcast %c3037148_i32_49 : i32 to vector<2x128xi32>
    %326 = arith.select %323, %325, %303 : vector<2x128xi1>, vector<2x128xi32>
    %c56 = arith.constant 56 : index
    %327 = memref.load %arg3[%c56] : memref<64xf32, #tpu.memory_space<smem>>
    %328 = vector.broadcast %327 : f32 to vector<2x128xf32>
    %329 = arith.mulf %1, %328 : vector<2x128xf32>
    %c57 = arith.constant 57 : index
    %330 = memref.load %arg3[%c57] : memref<64xf32, #tpu.memory_space<smem>>
    %331 = vector.broadcast %330 : f32 to vector<2x128xf32>
    %332 = arith.mulf %3, %331 : vector<2x128xf32>
    %333 = arith.addf %329, %332 : vector<2x128xf32>
    %c58 = arith.constant 58 : index
    %334 = memref.load %arg3[%c58] : memref<64xf32, #tpu.memory_space<smem>>
    %335 = vector.broadcast %334 : f32 to vector<2x128xf32>
    %336 = arith.mulf %5, %335 : vector<2x128xf32>
    %337 = arith.addf %333, %336 : vector<2x128xf32>
    %c59 = arith.constant 59 : index
    %338 = memref.load %arg3[%c59] : memref<64xf32, #tpu.memory_space<smem>>
    %339 = vector.broadcast %338 : f32 to vector<2x128xf32>
    %340 = arith.mulf %7, %339 : vector<2x128xf32>
    %341 = arith.addf %337, %340 : vector<2x128xf32>
    %342 = arith.cmpf ogt, %341, %320 : vector<2x128xf32>
    %343 = arith.select %342, %341, %320 : vector<2x128xi1>, vector<2x128xf32>
    %c11403431_i32_50 = arith.constant 11403431 : i32
    %344 = vector.broadcast %c11403431_i32_50 : i32 to vector<2x128xi32>
    %345 = arith.select %342, %344, %322 : vector<2x128xi1>, vector<2x128xi32>
    %346 = arith.cmpf olt, %341, %324 : vector<2x128xf32>
    %347 = arith.select %346, %341, %324 : vector<2x128xi1>, vector<2x128xf32>
    %c42496_i32_51 = arith.constant 42496 : i32
    %348 = vector.broadcast %c42496_i32_51 : i32 to vector<2x128xi32>
    %349 = arith.select %346, %348, %326 : vector<2x128xi1>, vector<2x128xi32>
    %c60 = arith.constant 60 : index
    %350 = memref.load %arg3[%c60] : memref<64xf32, #tpu.memory_space<smem>>
    %351 = vector.broadcast %350 : f32 to vector<2x128xf32>
    %352 = arith.mulf %1, %351 : vector<2x128xf32>
    %c61 = arith.constant 61 : index
    %353 = memref.load %arg3[%c61] : memref<64xf32, #tpu.memory_space<smem>>
    %354 = vector.broadcast %353 : f32 to vector<2x128xf32>
    %355 = arith.mulf %3, %354 : vector<2x128xf32>
    %356 = arith.addf %352, %355 : vector<2x128xf32>
    %c62 = arith.constant 62 : index
    %357 = memref.load %arg3[%c62] : memref<64xf32, #tpu.memory_space<smem>>
    %358 = vector.broadcast %357 : f32 to vector<2x128xf32>
    %359 = arith.mulf %5, %358 : vector<2x128xf32>
    %360 = arith.addf %356, %359 : vector<2x128xf32>
    %c63 = arith.constant 63 : index
    %361 = memref.load %arg3[%c63] : memref<64xf32, #tpu.memory_space<smem>>
    %362 = vector.broadcast %361 : f32 to vector<2x128xf32>
    %363 = arith.mulf %7, %362 : vector<2x128xf32>
    %364 = arith.addf %360, %363 : vector<2x128xf32>
    %365 = arith.cmpf ogt, %364, %343 : vector<2x128xf32>
    %366 = arith.select %365, %364, %343 : vector<2x128xi1>, vector<2x128xf32>
    %c12533348_i32_52 = arith.constant 12533348 : i32
    %367 = vector.broadcast %c12533348_i32_52 : i32 to vector<2x128xi32>
    %368 = arith.select %365, %367, %345 : vector<2x128xi1>, vector<2x128xi32>
    %369 = arith.cmpf olt, %364, %347 : vector<2x128xf32>
    %370 = arith.select %369, %364, %347 : vector<2x128xi1>, vector<2x128xf32>
    %c12868362_i32_53 = arith.constant 12868362 : i32
    %371 = vector.broadcast %c12868362_i32_53 : i32 to vector<2x128xi32>
    %372 = arith.select %369, %371, %349 : vector<2x128xi1>, vector<2x128xi32>
    %cst_54 = arith.constant 0.000000e+00 : f32
    %373 = vector.broadcast %cst_54 : f32 to vector<2x128xf32>
    %374 = arith.subf %373, %370 : vector<2x128xf32>
    %375 = arith.cmpf oge, %366, %374 : vector<2x128xf32>
    %376 = arith.select %375, %368, %372 : vector<2x128xi1>, vector<2x128xi32>
    %c0_55 = arith.constant 0 : index
    %c3_56 = arith.constant 3 : index
    %c0_57 = arith.constant 0 : index
    %c0_58 = arith.constant 0 : index
    %377 = vector.load %arg4[%c0_55, %c3_56, %c0_57, %c0_58] : memref<1x4x2x128xi32, #tpu.memory_space<vmem>>, vector<1x1x2x128xi32>
    %378 = vector.shape_cast %377 : vector<1x1x2x128xi32> to vector<2x128xi32>
    %379 = vector.shape_cast %376 : vector<2x128xi32> to vector<1x1x2x128xi32>
    tpu.vector_store %arg4[%c0_55, %c3_56, %c0_57, %c0_58], %379 {strides = array<i32>} : memref<1x4x2x128xi32, #tpu.memory_space<vmem>>, vector<1x1x2x128xi32>,
    return
  }
  func.func @transform_0(%arg0: i32, %arg1: i32) -> (i32, i32, i32, i32) {
    %c0_i32 = arith.constant 0 : i32
    %c0_i32_0 = arith.constant 0 : i32
    %c0_i32_1 = arith.constant 0 : i32
    return %arg0, %c0_i32, %arg1, %c0_i32_0 : i32, i32, i32, i32
  }
  func.func @transform_1(%arg0: i32, %arg1: i32) -> i32 {
    %c0_i32 = arith.constant 0 : i32
    %c0_i32_0 = arith.constant 0 : i32
    return %c0_i32 : i32
  }
  func.func @transform_2(%arg0: i32, %arg1: i32) -> (i32, i32, i32, i32) {
    %c0_i32 = arith.constant 0 : i32
    %c0_i32_0 = arith.constant 0 : i32
    %c0_i32_1 = arith.constant 0 : i32
    return %arg0, %c0_i32, %arg1, %c0_i32_0 : i32, i32, i32, i32
  }
}

</mosaic_0001>

<bundles_post_ra>
// kernel: tpu_custom_call.1
= control target key start
LH: loop header
LB: loop body
LE: loop exit
PB: predicated region body
PF: predicated region fallthrough
CT: control target
= control target key end

     0   :  { %7 = vsyncpa [#allocation3], 0  ;;  %s1361_s0 = inlined_call_operand.hbm [shape: f32[2,4,2,128], index: 0, kind: input, shape index: {}]   ;;  %s1362_s1 = inlined_call_operand.hbm [shape: f32[64], index: 1, kind: input, shape index: {}]   ;;  %s1363_s2 = inlined_call_operand.hbm [shape: u32[2,4,2,128], index: 2, kind: output, shape index: {}]  }
   0x1   :  { %9 = vsyncpa [#allocation3 + $0x1], 0 }
   0x2   :  { %10 = vsyncpa [#allocation5], 0 }
   0x3   :  { %11 = vsyncpa [#allocation4], 0 }
   0x4   :  { %13 = vsyncpa [#allocation4 + $0x1], 0  ;;  %s969_s9 = smov 0   ;;  %s971_s10 = smov 0  }
   0x5   :  { %s973_s11 = smov 0   ;;  %s975_s12 = smov 0  }
   0x6   :  { %s977_s13 = smov 0   ;;  %s979_s14 = smov 0  }
   0x7 LB: > { %s647_s15 = sadd.s32 4294967295, %s945_s14   ;;  %s648_s16 = sadd.s32 4294967294, %s945_s14   ;;  %s945_s14 = sphi %s979_s14, %s19_s14   ;;  %s941_s13 = sphi %s977_s13, %s1375_s13   ;;  %s937_s12 = sphi %s975_s12, %s1374_s12   ;;  %s933_s11 = sphi %s973_s11, %s1373_s11   ;;  %s929_s10 = sphi %s971_s10, %s1372_s10   ;;  %s925_s9 = sphi %s969_s9, %s1371_s9  }
   0x8   : > { %s40_s17 = sadd.s32 1, %s933_s11  ;;  %p47_p0 = scmp.ne.s32.totalorder %s933_s11, %s929_s10 }
   0x9   : > { %p48_p1 = scmp.eq.s32.totalorder %s945_s14, 0  ;;  %p53_p2 = scmp.ne.s32.totalorder %s929_s10, %s925_s9 }
   0xa   : > { %p1007_p3 = scmp.eq.s32.totalorder %s647_s15, 0  ;;  %p100_p4 = scmp.eq.s32.totalorder %s647_s15, 1 }
   0xb   : > { %p1011_p5 = por %p48_p1, %p47_p0  ;;  %p106_p6 = scmp.eq.s32.totalorder %s648_s16, 1 }
   0xc   : > { %p1017_p7 = por %p1007_p3, %p53_p2  ;;  %p1021_p8 = por %p100_p4, %p47_p0 }
   0xd   : > { %p1025_p9 = por %p106_p6, %p53_p2  ;;  %p649_p10 = scmp.ge.s32.totalorder %s945_s14, 1 }
   0xe   : > { %p113_p11 = scmp.lt.s32.totalorder %s945_s14, 3  ;;  %s125_s25 = sshll.u32 %s1362_s1, 4  ;;  %s126_s25 = int_to_ptr.hbm [resolvable:$true] %s125_s25 }
   0xf   : > { %p651_p13 = scmp.ge.s32.totalorder %s945_s14, 2  ;;  %p756_p0 = scmp.lt.s32.totalorder %s945_s14, 2 }
  0x10   : > { %p1034_p12 = pnand %p649_p10, %p113_p11  ;;  %s31_s28 = sadd.s32 1, %s941_s13 }
  0x11   : > { %p1044_p2 = pnand %p756_p0, %p1011_p5  ;;  %p33_p6 = scmp.ge.s32.totalorder %s31_s28, 2 }
  0x12   : > { %p743_p1 = pneg %p1034_p12  ;;  %s136_s29 = sand.u32 1, %s933_s11  }
  0x13   : > { %s947_s30 = smov [#allocation6]   ;;  %s1377_s28 = smov (%p33_p6, %s31_s28), 0 }
  0x14   : > { %p744_p4 = pnand %p743_p1, %p1007_p3  ;;  %s652_s3 = sshll.u32 %s136_s29, 3 }
  0x15   : > { %s35_s4 = ssub.s32 %s941_s13, %s1377_s28  ;;  %s733_s5 = sshll.u32 %s941_s13, 3 }
  0x16   : > { %746 = dma.hbm_to_smem (!%p744_p4), %s126_s25, 16, %s947_s30, [#allocation5]  }
  0x17   : > { %p38_p10 = scmp.eq.s32.totalorder %s35_s4, 0  ;;  %s146_s8 = scalar_lea.hbm %s1361_s0, %s733_s5 }
  0x18   : > { %s140_s15 = scalar_lea.vmem [#allocation2], %s652_s3  ;;  %s147_s23 = sshll.u32 %s146_s8, 4  ;;  %s148_s23 = int_to_ptr.hbm [resolvable:$true] %s147_s23 }
  0x19   : > { %s149_s16 = sshll.u32 %s140_s15, 4  ;;  %s137_s24 = scalar_lea.sflag [#allocation3], %s136_s29  ;;  %s150_s16 = int_to_ptr.vmem [resolvable:$true] %s149_s16 }
  0x1a   : > { %s1063_s19 = scalar_select %p38_p10, %s933_s11, %s40_s17  }
  0x1b   : > { %s948_s25 = smov 32   ;;  %s949_s30 = smov 2  }
  0x1c   : > { %750 = dma.hbm_to_vmem [thread:$0]  (!%p1044_p2), %s148_s23, 128, %s150_s16, %s137_s24, %s948_s25, %s948_s25, %s949_s30  }
  0x1d   : > { %161 = sbr.rel (%p1034_p12) target bundleno = 127 (0x7f), region = 28  ;;  %s1070_s4 = sand.u32 (!%p1034_p12), 1, %s929_s10  }
  0x1e   : > { %s656_s17 = sshll.u32 (!%p1034_p12), %s1070_s4, 3  ;;  %s164_s3 = scalar_lea.sflag (!%p1034_p12), [#allocation3], %s1070_s4 }
  0x1f   : > { %s167_s5 = scalar_lea.vmem (!%p1034_p12), [#allocation2], %s656_s17 }
  0x22   : > { %912 = dma.done.wait (%p1017_p7), %s164_s3, 128  }
  0x23   : > { %914 = vsyncadd (%p1017_p7), %s164_s3, 4294967168 }
  0x24   : > { %916 = dma.done.wait (%p1007_p3), [#allocation5], 16  }
  0x25   : > { %918 = vsyncadd (%p1007_p3), [#allocation5], 4294967280 }
  0x26   : > { %178 = sfence }
  0x27   : > { %s202_s26 = sld [smem:[#allocation6]]  ;;  %v1084_v0 = vld [vmem:[%s167_s5] sm:$0x3]  ;;  %v1086_v1 = vld [vmem:[%s167_s5 + $0x2] sm:$0x3]  ;;  %v950_v41 = vmov 11640832  }
  0x28   : > { %s662_s27 = sld [smem:[#allocation6 + $0x1]]  ;;  %v1088_v2 = vld [vmem:[%s167_s5 + $0x4] sm:$0x3]  ;;  %v1092_v8 = vld [vmem:[%s167_s5 + $0x6] sm:$0x3] }
  0x29   : > { %s663_s29 = sld [smem:[#allocation6 + $0x2]]  ;;  %v951_v44 = vmov 4923071  }
  0x2a   : > { %s664_s6 = sld [smem:[#allocation6 + $0x3]] }
  0x2b   : > { %s665_s7 = sld [smem:[#allocation6 + $0x4]] }
  0x2c   : > { %s666_s8 = sld [smem:[#allocation6 + $0x5]] }
  0x2d   : > { %v203_v3 = vstv %s202_s26  ;;  %s667_s20 = sld [smem:[#allocation6 + $0x6]] }
  0x2e   : > { %v204_v4 = vmul.f32 %v203_v3, %v1084_v0  ;;  %v206_v5 = vstv %s662_s27  ;;  %s668_s18 = sld [smem:[#allocation6 + $0x7]] }
  0x2f   : > { %v207_v6 = vmul.f32 %v1086_v1, %v206_v5  ;;  %v210_v7 = vstv %s663_s29  ;;  %s669_s15 = sld [smem:[#allocation6 + $0x8]] }
  0x30   : > { %v211_v9 = vmul.f32 %v1088_v2, %v210_v7  ;;  %v214_v10 = vstv %s664_s6  ;;  %s670_s16 = sld [smem:[#allocation6 + $0x9]] }
  0x31   : > { %v208_v11 = vadd.f32 %v207_v6, %v204_v4  ;;  %v218_v12 = vstv %s665_s7  ;;  %s671_s23 = sld [smem:[#allocation6 + $0xa]]  ;;  %v215_v16 = vmul.f32 %v1092_v8, %v214_v10 }
  0x32   : > { %v219_v13 = vmul.f32 %v218_v12, %v1084_v0  ;;  %v221_v14 = vstv %s666_s8  ;;  %s672_s24 = sld [smem:[#allocation6 + $0xb]] }
  0x33   : > { %v212_v15 = vadd.f32 %v211_v9, %v208_v11  ;;  %v222_v17 = vmul.f32 %v1086_v1, %v221_v14  ;;  %v225_v18 = vstv %s667_s20  ;;  %s673_s25 = sld [smem:[#allocation6 + $0xc]] }
  0x34   : > { %v226_v19 = vmul.f32 %v1088_v2, %v225_v18  ;;  %v229_v20 = vstv %s668_s18  ;;  %s674_s30 = sld [smem:[#allocation6 + $0xd]] }
  0x35   : > { %v223_v21 = vadd.f32 %v222_v17, %v219_v13  ;;  %v230_v22 = vmul.f32 %v1092_v8, %v229_v20  ;;  %v239_v23 = vstv %s669_s15  ;;  %s1100_s3 = sld [smem:[#allocation6 + $0xe]]  ;;  %v216_v26 = vadd.f32 %v215_v16, %v212_v15 }
  0x36   : > { %v240_v24 = vmul.f32 %v239_v23, %v1084_v0  ;;  %v242_v25 = vstv %s670_s16  ;;  %s1103_s5 = sld [smem:[#allocation6 + $0xf]] }
  0x37   : > { %v227_v27 = vadd.f32 %v226_v19, %v223_v21  ;;  %v243_v28 = vmul.f32 %v1086_v1, %v242_v25  ;;  %v246_v29 = vstv %s671_s23  ;;  %s1106_s26 = sld [smem:[#allocation6 + $0x10]] }
  0x38   : > { %v247_v30 = vmul.f32 %v1088_v2, %v246_v29  ;;  %v250_v31 = vstv %s672_s24  ;;  %s1109_s27 = sld [smem:[#allocation6 + $0x11]] }
  0x39   : > { %v231_v32 = vadd.f32 %v230_v22, %v227_v27  ;;  %v244_v33 = vadd.f32 %v243_v28, %v240_v24  ;;  %v251_v34 = vmul.f32 %v1092_v8, %v250_v31  ;;  %v260_v35 = vstv %s673_s25  ;;  %s1112_s29 = sld [smem:[#allocation6 + $0x12]] }
  0x3a   : > { %v261_v36 = vmul.f32 %v260_v35, %v1084_v0  ;;  %v263_v37 = vstv %s674_s30  ;;  %s1115_s6 = sld [smem:[#allocation6 + $0x13]] }
  0x3b   : > { %vm232_vm0 = vcmp.gt.f32.partialorder %v231_v32, %v216_v26  ;;  %vm235_vm1 = vcmp.lt.f32.partialorder %v231_v32, %v216_v26  ;;  %v248_v38 = vadd.f32 %v247_v30, %v244_v33  ;;  %v264_v39 = vmul.f32 %v1086_v1, %v263_v37  ;;  %s1118_s7 = sld [smem:[#allocation6 + $0x14]] }
  0x3c   : > { %v233_v40 = vsel %vm232_vm0, %v231_v32, %v216_v26  ;;  %v234_v42 = vsel %vm232_vm0, 15699246, %v950_v41  ;;  %v236_v43 = vsel %vm235_vm1, %v231_v32, %v216_v26  ;;  %v237_v45 = vsel %vm235_vm1, 3037148, %v951_v44  ;;  %s1122_s8 = sld [smem:[#allocation6 + $0x15]] }
  0x3d   : > { %v252_v46 = vadd.f32 %v251_v34, %v248_v38  ;;  %v265_v47 = vadd.f32 %v264_v39, %v261_v36  ;;  %v267_v48 = vstv %s1100_s3  ;;  %v271_v49 = vstv %s1103_s5  ;;  %s1126_s20 = sld [smem:[#allocation6 + $0x16]] }
  0x3e   : > { %v268_v50 = vmul.f32 %v1088_v2, %v267_v48  ;;  %v272_v51 = vmul.f32 %v1092_v8, %v271_v49  ;;  %v285_v52 = vstv %s1106_s26  ;;  %v288_v53 = vstv %s1109_s27  ;;  %s1132_s18 = sld [smem:[#allocation6 + $0x17]] }
  0x3f   : > { %vm253_vm2 = vcmp.gt.f32.partialorder %v252_v46, %v233_v40  ;;  %vm256_vm3 = vcmp.lt.f32.partialorder %v252_v46, %v236_v43  ;;  %v286_v54 = vmul.f32 %v285_v52, %v1084_v0  ;;  %v289_v55 = vmul.f32 %v1086_v1, %v288_v53  ;;  %s1136_s15 = sld [smem:[#allocation6 + $0x18]] }
  0x40   : > { %v254_v56 = vsel %vm253_vm2, %v252_v46, %v233_v40  ;;  %v255_v57 = vsel %vm253_vm2, 11403431, %v234_v42  ;;  %v257_v58 = vsel %vm256_vm3, %v252_v46, %v236_v43  ;;  %v258_v59 = vsel %vm256_vm3, 42496, %v237_v45  ;;  %s1138_s16 = sld [smem:[#allocation6 + $0x19]] }
  0x41   : > { %v269_v60 = vadd.f32 %v268_v50, %v265_v47  ;;  %v290_v61 = vadd.f32 %v289_v55, %v286_v54  ;;  %v292_v62 = vstv %s1112_s29  ;;  %v296_v63 = vstv %s1115_s6  ;;  %s1142_s23 = sld [smem:[#allocation6 + $0x1a]] }
  0x42   : > { %v293_v3 = vmul.f32 %v1088_v2, %v292_v62  ;;  %v297_v4 = vmul.f32 %v1092_v8, %v296_v63  ;;  %v300_v5 = vstv %s1118_s7  ;;  %v303_v6 = vstv %s1122_s8  ;;  %s1148_s24 = sld [smem:[#allocation6 + $0x1b]]  ;;  %s1184_s7 = scalar_lea.vmem [#allocation7], %s656_s17 }
  0x43   : > { %v273_v7 = vadd.f32 %v272_v51, %v269_v60  ;;  %v301_v9 = vmul.f32 %v300_v5, %v1084_v0  ;;  %v304_v10 = vmul.f32 %v1086_v1, %v303_v6  ;;  %v307_v11 = vstv %s1126_s20  ;;  %s1153_s25 = sld [smem:[#allocation6 + $0x1c]] }
  0x44   : > { %v294_v12 = vadd.f32 %v293_v3, %v290_v61  ;;  %v308_v13 = vmul.f32 %v1088_v2, %v307_v11  ;;  %v311_v14 = vstv %s1132_s18  ;;  %s1157_s30 = sld [smem:[#allocation6 + $0x1d]] }
  0x45   : > { %vm274_vm4 = vcmp.gt.f32.partialorder %v273_v7, %v254_v56  ;;  %vm277_vm5 = vcmp.lt.f32.partialorder %v273_v7, %v257_v58  ;;  %v305_v15 = vadd.f32 %v304_v10, %v301_v9  ;;  %v312_v16 = vmul.f32 %v1092_v8, %v311_v14  ;;  %s1160_s3 = sld [smem:[#allocation6 + $0x1e]] }
  0x46   : > { %v275_v17 = vsel %vm274_vm4, %v273_v7, %v254_v56  ;;  %v276_v18 = vsel %vm274_vm4, 12533348, %v255_v57  ;;  %v278_v19 = vsel %vm277_vm5, %v273_v7, %v257_v58  ;;  %v279_v20 = vsel %vm277_vm5, 12868362, %v258_v59  ;;  %s1162_s5 = sld [smem:[#allocation6 + $0x1f]] }
  0x47   : > { %v280_v21 = vsub.f32 0.0, %v278_v19  ;;  %v298_v22 = vadd.f32 %v297_v4, %v294_v12  ;;  %v309_v23 = vadd.f32 %v308_v13, %v305_v15  ;;  %v321_v24 = vstv %s1136_s15  ;;  %s1165_s26 = sld [smem:[#allocation6 + $0x20]] }
  0x48   : > { %v322_v25 = vmul.f32 %v321_v24, %v1084_v0  ;;  %v324_v26 = vstv %s1138_s16  ;;  %v328_v27 = vstv %s1142_s23  ;;  %v332_v28 = vstv %s1148_s24  ;;  %s1171_s27 = sld [smem:[#allocation6 + $0x21]] }
  0x49   : > { %vm281_vm6 = vcmp.ge.f32.partialorder %v275_v17, %v280_v21  ;;  %v313_v29 = vadd.f32 %v312_v16, %v309_v23  ;;  %v325_v30 = vmul.f32 %v1086_v1, %v324_v26  ;;  %v329_v31 = vmul.f32 %v1088_v2, %v328_v27  ;;  %s1175_s29 = sld [smem:[#allocation6 + $0x22]] }
  0x4a   : > { %v282_v32 = vsel %vm281_vm6, %v276_v18, %v279_v20  ;;  %v333_v33 = vmul.f32 %v1092_v8, %v332_v28  ;;  %v342_v34 = vstv %s1153_s25  ;;  %v345_v35 = vstv %s1157_s30  ;;  %s1180_s6 = sld [smem:[#allocation6 + $0x23]] }
  0x4b   : > { %283 = vst [vmem:[%s1184_s7] sm:$0x3] %v282_v32  ;;  %vm314_vm7 = vcmp.gt.f32.partialorder %v313_v29, %v298_v22  ;;  %vm317_vm8 = vcmp.lt.f32.partialorder %v313_v29, %v298_v22  ;;  %v326_v36 = vadd.f32 %v325_v30, %v322_v25  ;;  %v343_v37 = vmul.f32 %v342_v34, %v1084_v0  ;;  %s1188_s8 = sld [smem:[#allocation6 + $0x24]] }
  0x4c   : > { %v315_v38 = vsel %vm314_vm7, %v313_v29, %v298_v22  ;;  %v316_v39 = vsel %vm314_vm7, 15699246, %v950_v41  ;;  %v318_v40 = vsel %vm317_vm8, %v313_v29, %v298_v22  ;;  %v319_v42 = vsel %vm317_vm8, 3037148, %v951_v44  ;;  %s1192_s20 = sld [smem:[#allocation6 + $0x25]] }
  0x4d   : > { %v330_v43 = vadd.f32 %v329_v31, %v326_v36  ;;  %v346_v45 = vmul.f32 %v1086_v1, %v345_v35  ;;  %v349_v46 = vstv %s1160_s3  ;;  %v353_v47 = vstv %s1162_s5  ;;  %s1197_s17 = sld [smem:[#allocation6 + $0x26]] }
  0x4e   : > { %v350_v48 = vmul.f32 %v1088_v2, %v349_v46  ;;  %v354_v49 = vmul.f32 %v1092_v8, %v353_v47  ;;  %v368_v50 = vstv %s1165_s26  ;;  %v371_v51 = vstv %s1171_s27  ;;  %s1203_s18 = sld [smem:[#allocation6 + $0x27]] }
  0x4f   : > { %v334_v52 = vadd.f32 %v333_v33, %v330_v43  ;;  %v347_v53 = vadd.f32 %v346_v45, %v343_v37  ;;  %v369_v54 = vmul.f32 %v368_v50, %v1084_v0  ;;  %v372_v55 = vmul.f32 %v1086_v1, %v371_v51  ;;  %s1207_s15 = sld [smem:[#allocation6 + $0x28]] }
  0x50   : > { %v375_v56 = vstv %s1175_s29  ;;  %v379_v57 = vstv %s1180_s6  ;;  %s1211_s16 = sld [smem:[#allocation6 + $0x29]] }
  0x51   : > { %vm335_vm9 = vcmp.gt.f32.partialorder %v334_v52, %v315_v38  ;;  %vm338_vm10 = vcmp.lt.f32.partialorder %v334_v52, %v318_v40  ;;  %v351_v58 = vadd.f32 %v350_v48, %v347_v53  ;;  %v373_v59 = vadd.f32 %v372_v55, %v369_v54  ;;  %s1213_s23 = sld [smem:[#allocation6 + $0x2a]] }
  0x52   : > { %v336_v60 = vsel %vm335_vm9, %v334_v52, %v315_v38  ;;  %v337_v61 = vsel %vm335_vm9, 11403431, %v316_v39  ;;  %v339_v62 = vsel %vm338_vm10, %v334_v52, %v318_v40  ;;  %v340_v63 = vsel %vm338_vm10, 42496, %v319_v42  ;;  %s1215_s24 = sld [smem:[#allocation6 + $0x2b]] }
  0x53   : > { %v355_v3 = vadd.f32 %v354_v49, %v351_v58  ;;  %v376_v4 = vmul.f32 %v1088_v2, %v375_v56  ;;  %v380_v5 = vmul.f32 %v1092_v8, %v379_v57  ;;  %v383_v6 = vstv %s1188_s8  ;;  %s1220_s25 = sld [smem:[#allocation6 + $0x2c]] }
  0x54   : > { %v384_v7 = vmul.f32 %v383_v6, %v1084_v0  ;;  %v386_v9 = vstv %s1192_s20  ;;  %v390_v10 = vstv %s1197_s17  ;;  %v394_v11 = vstv %s1203_s18  ;;  %s1226_s30 = sld [smem:[#allocation6 + $0x2d]] }
  0x55   : > { %vm356_vm11 = vcmp.gt.f32.partialorder %v355_v3, %v336_v60  ;;  %vm359_vm12 = vcmp.lt.f32.partialorder %v355_v3, %v339_v62  ;;  %v377_v12 = vadd.f32 %v376_v4, %v373_v59  ;;  %v387_v13 = vmul.f32 %v1086_v1, %v386_v9  ;;  %s1229_s3 = sld [smem:[#allocation6 + $0x2e]] }
  0x56   : > { %v357_v14 = vsel %vm356_vm11, %v355_v3, %v336_v60  ;;  %v358_v15 = vsel %vm356_vm11, 12533348, %v337_v61  ;;  %v360_v16 = vsel %vm359_vm12, %v355_v3, %v339_v62  ;;  %v361_v17 = vsel %vm359_vm12, 12868362, %v340_v63  ;;  %s1231_s5 = sld [smem:[#allocation6 + $0x2f]] }
  0x57   : > { %v362_v18 = vsub.f32 0.0, %v360_v16  ;;  %v381_v19 = vadd.f32 %v380_v5, %v377_v12  ;;  %v388_v20 = vadd.f32 %v387_v13, %v384_v7  ;;  %v391_v21 = vmul.f32 %v1088_v2, %v390_v10  ;;  %s1234_s26 = sld [smem:[#allocation6 + $0x30]] }
  0x58   : > { %v395_v22 = vmul.f32 %v1092_v8, %v394_v11  ;;  %v404_v23 = vstv %s1207_s15  ;;  %v407_v24 = vstv %s1211_s16  ;;  %v411_v25 = vstv %s1213_s23  ;;  %s1240_s27 = sld [smem:[#allocation6 + $0x31]] }
  0x59   : > { %vm363_vm13 = vcmp.ge.f32.partialorder %v357_v14, %v362_v18  ;;  %v392_v26 = vadd.f32 %v391_v21, %v388_v20  ;;  %v405_v27 = vmul.f32 %v404_v23, %v1084_v0  ;;  %v408_v28 = vmul.f32 %v1086_v1, %v407_v24  ;;  %s1244_s29 = sld [smem:[#allocation6 + $0x32]] }
  0x5a   : > { %v364_v29 = vsel %vm363_vm13, %v358_v15, %v361_v17  ;;  %v412_v30 = vmul.f32 %v1088_v2, %v411_v25  ;;  %v415_v31 = vstv %s1215_s24  ;;  %v425_v32 = vstv %s1220_s25  ;;  %s1249_s6 = sld [smem:[#allocation6 + $0x33]] }
  0x5b   : > { %693 = vst [vmem:[%s1184_s7 + $0x2] sm:$0x3] %v364_v29  ;;  %v396_v33 = vadd.f32 %v395_v22, %v392_v26  ;;  %v409_v34 = vadd.f32 %v408_v28, %v405_v27  ;;  %v416_v35 = vmul.f32 %v1092_v8, %v415_v31  ;;  %v426_v36 = vmul.f32 %v425_v32, %v1084_v0  ;;  %s1254_s8 = sld [smem:[#allocation6 + $0x34]] }
  0x5c   : > { %v428_v37 = vstv %s1226_s30  ;;  %v432_v38 = vstv %s1229_s3  ;;  %v436_v39 = vstv %s1231_s5  ;;  %s1259_s20 = sld [smem:[#allocation6 + $0x35]] }
  0x5d   : > { %vm397_vm14 = vcmp.gt.f32.partialorder %v396_v33, %v381_v19  ;;  %vm400_vm15 = vcmp.lt.f32.partialorder %v396_v33, %v381_v19  ;;  %v413_v40 = vadd.f32 %v412_v30, %v409_v34  ;;  %v429_v42 = vmul.f32 %v1086_v1, %v428_v37  ;;  %s1262_s17 = sld [smem:[#allocation6 + $0x36]] }
  0x5e   : > { %v398_v43 = vsel %vm397_vm14, %v396_v33, %v381_v19  ;;  %v399_v45 = vsel %vm397_vm14, 15699246, %v950_v41  ;;  %v401_v46 = vsel %vm400_vm15, %v396_v33, %v381_v19  ;;  %v402_v47 = vsel %vm400_vm15, 3037148, %v951_v44  ;;  %s1266_s18 = sld [smem:[#allocation6 + $0x37]] }
  0x5f   : > { %v417_v48 = vadd.f32 %v416_v35, %v413_v40  ;;  %v430_v49 = vadd.f32 %v429_v42, %v426_v36  ;;  %v433_v50 = vmul.f32 %v1088_v2, %v432_v38  ;;  %v437_v51 = vmul.f32 %v1092_v8, %v436_v39  ;;  %s1270_s15 = sld [smem:[#allocation6 + $0x38]] }
  0x60   : > { %v451_v52 = vstv %s1234_s26  ;;  %v454_v53 = vstv %s1240_s27  ;;  %v458_v54 = vstv %s1244_s29  ;;  %v462_v55 = vstv %s1249_s6  ;;  %s1276_s16 = sld [smem:[#allocation6 + $0x39]]  ;;  %s734_s26 = sshll.u32 %s937_s12, 3 }
  0x61   : > { %vm418_vm0 = vcmp.gt.f32.partialorder %v417_v48, %v398_v43  ;;  %vm421_vm1 = vcmp.lt.f32.partialorder %v417_v48, %v401_v46  ;;  %v434_v56 = vadd.f32 %v433_v50, %v430_v49  ;;  %v452_v57 = vmul.f32 %v451_v52, %v1084_v0  ;;  %s1279_s23 = sld [smem:[#allocation6 + $0x3a]]  ;;  %s546_s6 = scalar_lea.hbm %s1363_s2, %s734_s26 }
  0x62   : > { %v419_v58 = vsel %vm418_vm0, %v417_v48, %v398_v43  ;;  %v420_v59 = vsel %vm418_vm0, 11403431, %v399_v45  ;;  %v422_v60 = vsel %vm421_vm1, %v417_v48, %v401_v46  ;;  %v423_v61 = vsel %vm421_vm1, 42496, %v402_v47  ;;  %s1281_s24 = sld [smem:[#allocation6 + $0x3b]]  ;;  %s547_s12 = sshll.u32 %s1184_s7, 4  ;;  %s548_s12 = int_to_ptr.vmem [resolvable:$true] %s547_s12 }
  0x63   : > { %v438_v62 = vadd.f32 %v437_v51, %v434_v56  ;;  %v455_v63 = vmul.f32 %v1086_v1, %v454_v53  ;;  %v459_v3 = vmul.f32 %v1088_v2, %v458_v54  ;;  %v463_v4 = vmul.f32 %v1092_v8, %v462_v55  ;;  %s1286_s25 = sld [smem:[#allocation6 + $0x3c]] }
  0x64   : > { %v466_v5 = vstv %s1254_s8  ;;  %v469_v6 = vstv %s1259_s20  ;;  %v473_v7 = vstv %s1262_s17  ;;  %v477_v9 = vstv %s1266_s18  ;;  %s1292_s30 = sld [smem:[#allocation6 + $0x3d]]  ;;  %s549_s8 = sshll.u32 %s546_s6, 4  ;;  %s550_s8 = int_to_ptr.hbm [resolvable:$true] %s549_s8 }
  0x65   : > { %vm439_vm2 = vcmp.gt.f32.partialorder %v438_v62, %v419_v58  ;;  %vm442_vm3 = vcmp.lt.f32.partialorder %v438_v62, %v422_v60  ;;  %v456_v10 = vadd.f32 %v455_v63, %v452_v57  ;;  %v467_v11 = vmul.f32 %v466_v5, %v1084_v0  ;;  %s1295_s3 = sld [smem:[#allocation6 + $0x3e]]  ;;  %s534_s20 = scalar_lea.sflag [#allocation4], %s1070_s4 }
  0x66   : > { %v440_v12 = vsel %vm439_vm2, %v438_v62, %v419_v58  ;;  %v441_v13 = vsel %vm439_vm2, 12533348, %v420_v59  ;;  %v443_v14 = vsel %vm442_vm3, %v438_v62, %v422_v60  ;;  %v444_v15 = vsel %vm442_vm3, 12868362, %v423_v61  ;;  %s1297_s5 = sld [smem:[#allocation6 + $0x3f]]  ;;  %s873_s17 = sshra.s32 %s550_s8, 4  ;;  %s874_s17 = int_to_ptr.hbm [resolvable:$true] %s873_s17 }
  0x67   : > { %v445_v16 = vsub.f32 0.0, %v443_v14  ;;  %v460_v17 = vadd.f32 %v459_v3, %v456_v10  ;;  %v470_v18 = vmul.f32 %v1086_v1, %v469_v6  ;;  %v474_v19 = vmul.f32 %v1088_v2, %v473_v7  ;;  %s875_s18 = scalar_lea.hbm %s874_s17, 8  ;;  %p880_p11 = scmp.lt.s32.totalorder %s874_s17, %s1363_s2 }
  0x68   : > { %v487_v20 = vstv %s1270_s15  ;;  %v490_v21 = vstv %s1276_s16  ;;  %v494_v22 = vstv %s1279_s23  ;;  %v478_v24 = vmul.f32 %v1092_v8, %v477_v9  ;;  %p876_p3 = scmp.ne.s32.totalorder %s874_s17, %s875_s18  ;;  %s879_s23 = scalar_lea.hbm %s1363_s2, 16 }
  0x69   : > { %vm446_vm4 = vcmp.ge.f32.partialorder %v440_v12, %v445_v16  ;;  %v471_v23 = vadd.f32 %v470_v18, %v467_v11  ;;  %v488_v25 = vmul.f32 %v487_v20, %v1084_v0  ;;  %v491_v27 = vmul.f32 %v1086_v1, %v490_v21  ;;  %p881_p12 = scmp.lt.s32.totalorder %s879_s23, %s875_s18 }
  0x6a   : > { %v447_v26 = vsel %vm446_vm4, %v441_v13, %v444_v15  ;;  %v495_v28 = vmul.f32 %v1088_v2, %v494_v22  ;;  %v498_v29 = vstv %s1281_s24  ;;  %v464_v30 = vadd.f32 %v463_v4, %v460_v17  ;;  %p877_p5 = pnand %p876_p3, %p1021_p8 }
  0x6b   : > { %710 = vst [vmem:[%s1184_s7 + $0x4] sm:$0x3] %v447_v26  ;;  %v475_v31 = vadd.f32 %v474_v19, %v471_v23  ;;  %v508_v32 = vstv %s1286_s25  ;;  %v511_v33 = vstv %s1292_s30  ;;  %v492_v34 = vadd.f32 %v491_v27, %v488_v25  ;;  %p882_p0 = por %p881_p12, %p880_p11 }
  0x6c   : > { %v509_v35 = vmul.f32 %v508_v32, %v1084_v0  ;;  %v512_v36 = vmul.f32 %v1086_v1, %v511_v33  ;;  %v515_v37 = vstv %s1295_s3  ;;  %v499_v39 = vmul.f32 %v1092_v8, %v498_v29  ;;  %p878_p7 = pneg %p877_p5 }
  0x6d   : > { %v479_v38 = vadd.f32 %v478_v24, %v475_v31  ;;  %v516_v40 = vmul.f32 %v1088_v2, %v515_v37  ;;  %v519_v42 = vstv %s1297_s5  ;;  %v496_v43 = vadd.f32 %v495_v28, %v492_v34 }
  0x6e   : > { %v513_v45 = vadd.f32 %v512_v36, %v509_v35  ;;  %v520_v46 = vmul.f32 %v1092_v8, %v519_v42  ;;  %p883_p1 = pnand %p882_p0, %p878_p7 }
  0x6f   : > { %vm480_vm5 = vcmp.gt.f32.partialorder %v479_v38, %v464_v30  ;;  %vm483_vm6 = vcmp.lt.f32.partialorder %v479_v38, %v464_v30  ;;  %v500_v49 = vadd.f32 %v499_v39, %v496_v43 }
  0x70   : > { %v481_v47 = vsel %vm480_vm5, %v479_v38, %v464_v30  ;;  %v484_v48 = vsel %vm483_vm6, %v479_v38, %v464_v30  ;;  %v482_v0 = vsel %vm480_vm5, 15699246, %v950_v41  ;;  %v485_v1 = vsel %vm483_vm6, 3037148, %v951_v44 }
  0x71   : > { %v517_v50 = vadd.f32 %v516_v40, %v513_v45  ;;  %vm501_vm7 = vcmp.gt.f32.partialorder %v500_v49, %v481_v47  ;;  %vm504_vm8 = vcmp.lt.f32.partialorder %v500_v49, %v484_v48 }
  0x72   : > { %v502_v51 = vsel %vm501_vm7, %v500_v49, %v481_v47  ;;  %v503_v52 = vsel %vm501_vm7, 11403431, %v482_v0  ;;  %v505_v8 = vsel %vm504_vm8, %v500_v49, %v484_v48  ;;  %v506_v53 = vsel %vm504_vm8, 42496, %v485_v1 }
  0x73   : > { %v521_v2 = vadd.f32 %v520_v46, %v517_v50 }
  0x75   : > { %vm522_vm9 = vcmp.gt.f32.partialorder %v521_v2, %v502_v51  ;;  %vm525_vm10 = vcmp.lt.f32.partialorder %v521_v2, %v505_v8 }
  0x76   : > { %v523_v41 = vsel %vm522_vm9, %v521_v2, %v502_v51  ;;  %v526_v44 = vsel %vm525_vm10, %v521_v2, %v505_v8  ;;  %v524_v54 = vsel %vm522_vm9, 12533348, %v503_v52  ;;  %v527_v55 = vsel %vm525_vm10, 12868362, %v506_v53 }
  0x77   : > { %v528_v56 = vsub.f32 0.0, %v526_v44 }
  0x79   : > { %vm529_vm11 = vcmp.ge.f32.partialorder %v523_v41, %v528_v56 }
  0x7a   : > { %v530_v57 = vsel %vm529_vm11, %v524_v54, %v527_v55 }
  0x7b   : > { %727 = vst [vmem:[%s1184_s7 + $0x6] sm:$0x3] %v530_v57 }
  0x7c   : > { %886 = shalt.err (!%p883_p1)
}
  0x7d   : > { %s952_s4 = smov 32   ;;  %s953_s7 = smov 2  }
  0x7e   : > { %741 = dma.vmem_to_hbm [thread:$0]  (%p1021_p8), %s548_s12, 128, %s550_s8, %s534_s20, %s952_s4, %s952_s4, %s953_s7  }
  0x7f PF: > { %s564_s30 = sand.u32 1, %s925_s9   ;;  %p752_p2 = pnand %p651_p13, %p1025_p9 }
  0x80   : > { %s565_s3 = scalar_lea.sflag [#allocation4], %s564_s30 }
  0x81   : > { %p753_p4 = pneg %p752_p2 }
  0x83   : > { %920 = dma.done.wait (%p753_p4), %s565_s3, 128  }
  0x84   : > { %922 = vsyncadd (%p753_p4), %s565_s3, 4294967168  ;;  %s19_s14 = sadd.s32 1, %s945_s14   ;;  %s1371_s9 = smov %s929_s10 }
  0x85   : > { %p16_p6 = scmp.ge.s32.totalorder %s19_s14, 4   ;;  %s1372_s10 = smov %s933_s11 }
  0x86   : > { %s1373_s11 = smov %s1063_s19  ;;  %s1374_s12 = smov %s941_s13 }
  0x87   : > { %s1375_s13 = smov %s1377_s28  ;;  %18 = sbr.rel (!%p16_p6) target bundleno = 7 (0x7), region = 84 }
  0x8c   :  { %571 = vsyncpa [#allocation3], 1 }
  0x8d   :  { %573 = vsyncpa [#allocation3 + $0x1], 1 }
  0x8e   :  { %574 = vsyncpa [#allocation4], 1 }
  0x8f   :  { %576 = vsyncpa [#allocation4 + $0x1], 1 }
  0x90   :  { %577 = vsyncpa [#allocation5], 1 }
  0x91   :  { %579 = vsyncpa [#allocation5 + $0x1], 1 }

</bundles_post_ra>
